<compile_context>
chip_gen: v7x
topology: tpu7x:2x2x1
jax: 0.10.0
libtpu: 0.0.40
codegen_flags: <defaults>
</compile_context>

<pallas_src>
import functools

import jax
import jax.numpy as jnp
from jax import lax
from jax.experimental import pallas as pl
from jax.experimental.pallas import tpu as pltpu


# ----------------------------------------------------------------------------
# Tiling helpers
# ----------------------------------------------------------------------------
def _pick_tn(R, requested):
    """Destination (lane) tile: divisor of R, lane-dense if possible."""
    if requested is not None and R % requested == 0:
        return requested
    for cand in (512, 384, 256, 128):
        if R % cand == 0:
            return cand
    return R


def _pick_tk(H, W, requested):
    """Source chunk = whole image rows: TK = W*rows, rows | H, TK >= ~128."""
    if (requested is not None and requested % W == 0
            and H % max(requested // W, 1) == 0):
        return requested, requested // W
    rows = H
    for r in range(1, H + 1):
        if H % r == 0 and W * r >= 128:
            rows = r
            break
    return W * rows, rows


# ----------------------------------------------------------------------------
# Pallas kernel: bilinear affine warp, one (C, TN) output tile per grid step
# ----------------------------------------------------------------------------
def _warp_kernel(klo_ref, khi_ref, sx_ref, sy_ref, sq_ref, rb_ref,
                 src_ref, out_ref, *, TK, rows_per_chunk, use_bf16):
    n = pl.program_id(0)      # warped CAV index
    t = pl.program_id(1)      # destination tile

    sx = sx_ref[...]          # (1, TN)  sample x (pixels) for this dst tile
    sy = sy_ref[...]          # (1, TN)  sample y (pixels)
    sq = sq_ref[...]          # (TK, 1)  within-chunk source column
    rb = rb_ref[...]          # (TK, 1)  within-chunk source row offset

    # x-direction tent is identical for every source chunk -> build once per
    # grid step, outside the contraction loop.
    xtent = jnp.maximum(0.0, 1.0 - jnp.abs(sx - sq))            # (TK, TN)
    if use_bf16:
        xtent = xtent.astype(jnp.bfloat16)

    out_ref[...] = jnp.zeros_like(out_ref)

    klo = klo_ref[n, t]
    khi = khi_ref[n, t]

    def body(k, carry):
        row0 = (k * rows_per_chunk).astype(jnp.float32)
        ytent = jnp.maximum(0.0, 1.0 - jnp.abs(sy - (rb + row0)))  # (TK, TN)
        if use_bf16:
            wt = ytent.astype(jnp.bfloat16) * xtent
        else:
            wt = ytent * xtent
        off = pl.multiple_of(k * TK, TK)
        src = src_ref[:, pl.ds(off, TK)]                           # (C, TK)
        if use_bf16:
            src = src.astype(jnp.bfloat16)
        else:
            src = src.astype(jnp.float32)
        out_ref[...] += jnp.dot(src, wt, preferred_element_type=jnp.float32)
        return carry

    lax.fori_loop(klo, khi + 1, body, 0)


def warp_affine_pallas(src, theta, *, tile_n=None, tile_k=None,
                       use_bf16_mxu=False):
    """src: (N, C, H, W); theta: (N, 2, 3) normalized affine (align_corners)."""
    N, C, H, W = src.shape
    R = H * W
    TN = _pick_tn(R, tile_n)           # destination tile (output lane dim)
    TK, RPC = _pick_tk(H, W, tile_k)   # source chunk (RPC whole image rows)
    T_dst = R // TN

    src_flat = src.reshape(N, C, R)

    # ---- fold affine_grid + de-normalization into pixel-space coefficients --
    theta = theta.astype(jnp.float32)
    a, b, c = theta[:, 0, 0], theta[:, 0, 1], theta[:, 0, 2]
    d, e, f = theta[:, 1, 0], theta[:, 1, 1], theta[:, 1, 2]
    wx = 0.5 * max(W - 1, 1)           # static guard for W==1 / H==1
    hy = 0.5 * max(H - 1, 1)
    ax = a
    bx = b * (wx / hy)
    cx = wx * (c + 1.0 - a - b)
    ay = d * (hy / wx)
    by = e
    cy = hy * (f + 1.0 - d - e)

    # ---- destination sample coords precomputed host-side (no kernel //, %) --
    o = jnp.arange(R, dtype=jnp.int32)
    dj = (o % W).astype(jnp.float32)                               # dest col
    di = (o // W).astype(jnp.float32)                              # dest row
    sx = (ax[:, None] * dj[None, :] + bx[:, None] * di[None, :]
          + cx[:, None]).reshape(N, 1, R)                          # (N,1,R)
    sy = (ay[:, None] * dj[None, :] + by[:, None] * di[None, :]
          + cy[:, None]).reshape(N, 1, R)

    # ---- constant within-chunk source row/col offsets (chunks = whole rows) -
    s = jnp.arange(TK, dtype=jnp.int32)
    sq_col = (s % W).astype(jnp.float32).reshape(TK, 1)
    row_off = (s // W).astype(jnp.float32).reshape(TK, 1)

    # ---- conservative per-(n, dst-tile) source chunk range (affine locality)
    t_idx = jnp.arange(T_dst, dtype=jnp.int32)
    di_lo = ((t_idx * TN) // W).astype(jnp.float32)                # (T_dst,)
    di_hi = ((t_idx * TN + TN - 1) // W).astype(jnp.float32)
    ay_, by_, cy_ = ay[:, None], by[:, None], cy[:, None]          # (N, 1)
    sy_min = (cy_ + jnp.minimum(0.0, ay_ * (W - 1))
              + jnp.minimum(by_ * di_lo, by_ * di_hi))             # (N, T_dst)
    sy_max = (cy_ + jnp.maximum(0.0, ay_ * (W - 1))
              + jnp.maximum(by_ * di_lo, by_ * di_hi))
    slack = 1e-3                                                   # fp safety
    row_lo = jnp.maximum(jnp.floor(sy_min - 1.0 - slack), 0.0)
    row_hi = jnp.minimum(jnp.ceil(sy_max + 1.0 + slack), float(H - 1))
    empty = row_lo > row_hi
    k_lo = jnp.where(empty, 1,
                     row_lo.astype(jnp.int32) // RPC).astype(jnp.int32)
    k_hi = jnp.where(empty, 0,
                     row_hi.astype(jnp.int32) // RPC).astype(jnp.int32)

    # ---- VMEM budget / compiler params ---------------------------------------
    itemsize = jnp.dtype(src.dtype).itemsize
    est = (2 * C * R * itemsize                     # resident src slab (x2 buf)
           + 4 * (2 * C * TN                        # output block (x2 buf)
                  + 4 * TN + 4 * TK                 # sx/sy + sq/row_off
                  + 5 * TK * TN)                    # live (TK,TN) temporaries
           + (2 << 20))
    cp_kwargs = dict(dimension_semantics=("parallel", "parallel"))
    if est > (12 << 20):
        try:
            cap = int(pltpu.get_tpu_info().vmem_capacity_bytes) // 2
        except Exception:
            cap = 32 << 20          # conservative: v7x has 64 MiB / TensorCore
        cp_kwargs["vmem_limit_bytes"] = int(min(est, cap))
    cp = pltpu.CompilerParams(**cp_kwargs)

    kernel = functools.partial(_warp_kernel, TK=TK, rows_per_chunk=RPC,
                               use_bf16=use_bf16_mxu)

    out_flat = pl.pallas_call(
        kernel,
        out_shape=jax.ShapeDtypeStruct((N, C, R), jnp.float32),
        grid_spec=pltpu.PrefetchScalarGridSpec(
            num_scalar_prefetch=2,
            grid=(N, T_dst),
            in_specs=[
                pl.BlockSpec((None, 1, TN), lambda n, t, klo, khi: (n, 0, t)),
                pl.BlockSpec((None, 1, TN), lambda n, t, klo, khi: (n, 0, t)),
                pl.BlockSpec((TK, 1), lambda n, t, klo, khi: (0, 0)),
                pl.BlockSpec((TK, 1), lambda n, t, klo, khi: (0, 0)),
                pl.BlockSpec((None, C, R), lambda n, t, klo, khi: (n, 0, 0)),
            ],
            out_specs=pl.BlockSpec((None, C, TN),
                                   lambda n, t, klo, khi: (n, 0, t)),
        ),
        compiler_params=cp,
    )(k_lo, k_hi, sx, sy, sq_col, row_off, src_flat)

    out = out_flat.reshape(N, C, H, W)
    if out.dtype != src.dtype:
        out = out.astype(src.dtype)
    return out


# ----------------------------------------------------------------------------
# Plain-JAX glue mirroring opencood's torch_transformation_utils
# ----------------------------------------------------------------------------
def get_discretized_transformation_matrix(matrix, discrete_ratio, downsample_rate):
    # matrix: (B, L, 4, 4) -> (B, L, 2, 3); rows [0,1], cols [0,1,3],
    # translation scaled by 1/(discrete_ratio * downsample_rate)
    m = matrix[:, :, 0:2, :]
    m = jnp.stack([m[..., 0], m[..., 1], m[..., 3]], axis=-1)
    scale = discrete_ratio * downsample_rate
    m = jnp.concatenate([m[..., :2], m[..., 2:3] / scale], axis=-1)
    return m.astype(jnp.float32)


def _normal_transform_pixel(height, width, eps=1e-14):
    w_denom = eps if width == 1 else width - 1.0
    h_denom = eps if height == 1 else height - 1.0
    return jnp.array([[2.0 / w_denom, 0.0, -1.0],
                      [0.0, 2.0 / h_denom, -1.0],
                      [0.0, 0.0, 1.0]], dtype=jnp.float32)


def get_transformation_matrix(M, dsize):
    # M: (N, 2, 3) pixel-space affine -> (N, 2, 3) theta for affine_grid
    # (kornia-style: invert the normalized homography)
    H, W = dsize
    N = M.shape[0]
    bottom = jnp.tile(jnp.array([[[0.0, 0.0, 1.0]]], jnp.float32), (N, 1, 1))
    M_h = jnp.concatenate([M.astype(jnp.float32), bottom], axis=1)   # (N,3,3)
    norm = _normal_transform_pixel(H, W)
    dst_norm_trans_src_norm = norm @ M_h @ jnp.linalg.inv(norm)
    src_norm_trans_dst_norm = jnp.linalg.inv(dst_norm_trans_src_norm)
    return src_norm_trans_dst_norm[:, :2, :]


def sttf_forward(x, mask, spatial_correction_matrix, *,
                 discrete_ratio, downsample_rate,
                 tile_n=None, tile_k=None, use_bf16_mxu=False):
    # x: (B, L, H, W, C); mask is unused by STTF (matches the PyTorch module)
    del mask
    B, L, H, W, C = x.shape
    x_nchw = jnp.transpose(x, (0, 1, 4, 2, 3))                       # (B,L,C,H,W)
    dist_m = get_discretized_transformation_matrix(
        spatial_correction_matrix, discrete_ratio, downsample_rate)  # (B,L,2,3)
    T = get_transformation_matrix(dist_m[:, 1:].reshape(-1, 2, 3), (H, W))
    src = x_nchw[:, 1:].reshape(-1, C, H, W)
    cav = warp_affine_pallas(src, T, tile_n=tile_n, tile_k=tile_k,
                             use_bf16_mxu=use_bf16_mxu)
    cav = cav.reshape(B, L - 1, C, H, W)
    out = jnp.concatenate([x_nchw[:, 0:1], cav], axis=1)
    return jnp.transpose(out, (0, 1, 3, 4, 2))                       # (B,L,H,W,C)


# ----------------------------------------------------------------------------
# Pure-JAX gather-based reference (correctness check only)
# ----------------------------------------------------------------------------
def _warp_affine_ref(src, theta):
    N, C, H, W = src.shape
    jj, ii = jnp.meshgrid(jnp.arange(W, dtype=jnp.float32),
                          jnp.arange(H, dtype=jnp.float32))
    xn = 2.0 * jj / (W - 1.0) - 1.0
    yn = 2.0 * ii / (H - 1.0) - 1.0
    base = jnp.stack([xn, yn, jnp.ones_like(xn)], axis=-1)           # (H,W,3)
    grid = jnp.einsum('nab,hwb->nhwa', theta, base)                  # (N,H,W,2)
    sx = (grid[..., 0] + 1.0) * 0.5 * (W - 1.0)
    sy = (grid[..., 1] + 1.0) * 0.5 * (H - 1.0)

    def sample_one(img, sx, sy):
        x0 = jnp.floor(sx)
        y0 = jnp.floor(sy)

        def gather(xi, yi):
            valid = ((xi >= 0) & (xi <= W - 1) & (yi >= 0) & (yi <= H - 1))
            xc = jnp.clip(xi, 0, W - 1).astype(jnp.int32)
            yc = jnp.clip(yi, 0, H - 1).astype(jnp.int32)
            return img[:, yc, xc] * valid.astype(img.dtype)

        w00 = (x0 + 1.0 - sx) * (y0 + 1.0 - sy)
        w01 = (sx - x0) * (y0 + 1.0 - sy)
        w10 = (x0 + 1.0 - sx) * (sy - y0)
        w11 = (sx - x0) * (sy - y0)
        return (gather(x0, y0) * w00 + gather(x0 + 1.0, y0) * w01 +
                gather(x0, y0 + 1.0) * w10 + gather(x0 + 1.0, y0 + 1.0) * w11)

    return jax.vmap(sample_one)(src, sx, sy)


def sttf_forward_ref(x, mask, scm, *, discrete_ratio, downsample_rate):
    del mask
    B, L, H, W, C = x.shape
    x_nchw = jnp.transpose(x, (0, 1, 4, 2, 3))
    dist_m = get_discretized_transformation_matrix(scm, discrete_ratio,
                                                   downsample_rate)
    T = get_transformation_matrix(dist_m[:, 1:].reshape(-1, 2, 3), (H, W))
    src = x_nchw[:, 1:].reshape(-1, C, H, W)
    cav = _warp_affine_ref(src, T).reshape(B, L - 1, C, H, W)
    out = jnp.concatenate([x_nchw[:, 0:1], cav], axis=1)
    return jnp.transpose(out, (0, 1, 3, 4, 2))


# ----------------------------------------------------------------------------
if __name__ == "__main__":
    # STTF has no learnable parameters; only config scalars from args.
    B, L, H, W, C = 2, 3, 16, 16, 8
    voxel_size = [0.4, 0.4, 4.0]
    downsample_rate = 4
    discrete_ratio = voxel_size[0]

    key = jax.random.PRNGKey(0)
    kx, ka, kt = jax.random.split(key, 3)
    x = jax.random.normal(kx, (B, L, H, W, C), dtype=jnp.float32)
    mask = jnp.ones((B, L), dtype=jnp.float32)   # unused by STTF

    # deterministic SE(2)-like pairwise correction matrices (4x4)
    ang = jax.random.uniform(ka, (B, L), minval=-0.3, maxval=0.3)
    trans = jax.random.uniform(kt, (B, L, 2), minval=-3.0, maxval=3.0)
    ca, sa = jnp.cos(ang), jnp.sin(ang)
    zeros, ones = jnp.zeros_like(ca), jnp.ones_like(ca)
    row0 = jnp.stack([ca, -sa, zeros, trans[..., 0]], axis=-1)
    row1 = jnp.stack([sa, ca, zeros, trans[..., 1]], axis=-1)
    row2 = jnp.stack([zeros, zeros, ones, zeros], axis=-1)
    row3 = jnp.stack([zeros, zeros, zeros, ones], axis=-1)
    spatial_correction_matrix = jnp.stack([row0, row1, row2, row3], axis=-2)

    # tile_n=tile_k=128 -> grid (N, 2), TK=128 (8 image rows per chunk):
    # exercises destination tiling and the per-tile source-span loop at 16x16.
    out = sttf_forward(x, mask, spatial_correction_matrix,
                       discrete_ratio=discrete_ratio,
                       downsample_rate=downsample_rate,
                       tile_n=128, tile_k=128)
    out = jax.block_until_ready(out)
    assert out.shape == (B, L, H, W, C), out.shape

    ref = sttf_forward_ref(x, mask, spatial_correction_matrix,
                           discrete_ratio=discrete_ratio,
                           downsample_rate=downsample_rate)
    ref = jax.block_until_ready(ref)
    assert jnp.allclose(out, ref, atol=1e-4, rtol=1e-4), (
        float(jnp.max(jnp.abs(out - ref))))

    # Auto-tiled configuration (single 256-wide destination tile at this size).
    out2 = sttf_forward(x, mask, spatial_correction_matrix,
                        discrete_ratio=discrete_ratio,
                        downsample_rate=downsample_rate)
    out2 = jax.block_until_ready(out2)
    assert jnp.allclose(out2, ref, atol=1e-4, rtol=1e-4), (
        float(jnp.max(jnp.abs(out2 - ref))))

    print("KERNEL_OK")
</pallas_src>

<mosaic_0001>
module attributes {stable_mosaic.version = 11 : i64} {
  func.func @_warp_kernel(%arg0: i32, %arg1: i32, %arg2: memref<4x2xi32, #tpu.memory_space<smem>>, %arg3: memref<4x2xi32, #tpu.memory_space<smem>>, %arg4: memref<1x1x128xf32, #tpu.memory_space<vmem>>, %arg5: memref<1x1x128xf32, #tpu.memory_space<vmem>>, %arg6: memref<128x1xf32, #tpu.memory_space<vmem>>, %arg7: memref<128x1xf32, #tpu.memory_space<vmem>>, %arg8: memref<1x8x256xf32, #tpu.memory_space<vmem>>, %arg9: memref<1x8x128xf32, #tpu.memory_space<vmem>>) attributes {dimension_semantics = [#tpu.dimension_semantics<parallel>, #tpu.dimension_semantics<parallel>], iteration_bounds = array<i64: 4, 2>, scalar_prefetch = 2 : i64, scratch_operands = 0 : i64, tpu.core_type = #tpu.core_type<tc>, window_params = [{transform_indices = @transform_0, window_bounds = array<i64: 1, 1, 128>}, {transform_indices = @transform_1, window_bounds = array<i64: 1, 1, 128>}, {pipeline_mode = #tpu.pipeline_mode<synchronous>, transform_indices = @transform_2, window_bounds = array<i64: 128, 1>}, {pipeline_mode = #tpu.pipeline_mode<synchronous>, transform_indices = @transform_3, window_bounds = array<i64: 128, 1>}, {transform_indices = @transform_4, window_bounds = array<i64: 1, 8, 256>}, {transform_indices = @transform_5, window_bounds = array<i64: 1, 8, 128>}]} {
    %c0 = arith.constant 0 : index
    %c0_0 = arith.constant 0 : index
    %c0_1 = arith.constant 0 : index
    %0 = vector.load %arg4[%c0, %c0_0, %c0_1] : memref<1x1x128xf32, #tpu.memory_space<vmem>>, vector<1x1x128xf32>
    %1 = vector.shape_cast %0 : vector<1x1x128xf32> to vector<1x128xf32>
    %c0_2 = arith.constant 0 : index
    %c0_3 = arith.constant 0 : index
    %c0_4 = arith.constant 0 : index
    %2 = vector.load %arg5[%c0_2, %c0_3, %c0_4] : memref<1x1x128xf32, #tpu.memory_space<vmem>>, vector<1x1x128xf32>
    %3 = vector.shape_cast %2 : vector<1x1x128xf32> to vector<1x128xf32>
    %c0_5 = arith.constant 0 : index
    %c0_6 = arith.constant 0 : index
    %4 = vector.load %arg6[%c0_5, %c0_6] : memref<128x1xf32, #tpu.memory_space<vmem>>, vector<128x1xf32>
    %c0_7 = arith.constant 0 : index
    %c0_8 = arith.constant 0 : index
    %5 = vector.load %arg7[%c0_7, %c0_8] : memref<128x1xf32, #tpu.memory_space<vmem>>, vector<128x1xf32>
    %6 = vector.broadcast %1 : vector<1x128xf32> to vector<128x128xf32>
    %7 = vector.broadcast %4 : vector<128x1xf32> to vector<128x128xf32>
    %8 = arith.subf %6, %7 : vector<128x128xf32>
    %9 = math.absf %8 : vector<128x128xf32>
    %cst = arith.constant 1.000000e+00 : f32
    %10 = vector.broadcast %cst : f32 to vector<128x128xf32>
    %11 = arith.subf %10, %9 : vector<128x128xf32>
    %cst_9 = arith.constant 0.000000e+00 : f32
    %12 = vector.broadcast %cst_9 : f32 to vector<128x128xf32>
    %13 = arith.maximumf %12, %11 : vector<128x128xf32>
    %cst_10 = arith.constant 0.000000e+00 : f32
    %14 = vector.broadcast %cst_10 : f32 to vector<8x128xf32>
    %c0_11 = arith.constant 0 : index
    %c0_12 = arith.constant 0 : index
    %c0_13 = arith.constant 0 : index
    %15 = vector.load %arg9[%c0_11, %c0_12, %c0_13] : memref<1x8x128xf32, #tpu.memory_space<vmem>>, vector<1x8x128xf32>
    %16 = vector.shape_cast %15 : vector<1x8x128xf32> to vector<8x128xf32>
    %17 = vector.shape_cast %14 : vector<8x128xf32> to vector<1x8x128xf32>
    tpu.vector_store %arg9[%c0_11, %c0_12, %c0_13], %17 {strides = array<i32>} : memref<1x8x128xf32, #tpu.memory_space<vmem>>, vector<1x8x128xf32>,
    %18 = arith.index_cast %arg0 : i32 to index
    %19 = arith.index_cast %arg1 : i32 to index
    %20 = memref.load %arg2[%18, %19] : memref<4x2xi32, #tpu.memory_space<smem>>
    %21 = arith.index_cast %arg0 : i32 to index
    %22 = arith.index_cast %arg1 : i32 to index
    %23 = memref.load %arg3[%21, %22] : memref<4x2xi32, #tpu.memory_space<smem>>
    %c1_i32 = arith.constant 1 : i32
    %24 = arith.addi %23, %c1_i32 : i32
    %c0_i32 = arith.constant 0 : i32
    %25 = arith.subi %24, %20 : i32
    %26 = arith.addi %20, %25 : i32
    %c1_i32_14 = arith.constant 1 : i32
    scf.for %arg10 = %20 to %26 step %c1_i32_14  : i32 {
      %c8_i32 = arith.constant 8 : i32
      %27 = arith.muli %arg10, %c8_i32 : i32
      %28 = arith.sitofp %27 : i32 to f32
      %29 = vector.broadcast %28 : f32 to vector<128x1xf32>
      %30 = arith.addf %5, %29 : vector<128x1xf32>
      %31 = vector.broadcast %3 : vector<1x128xf32> to vector<128x128xf32>
      %32 = vector.broadcast %30 : vector<128x1xf32> to vector<128x128xf32>
      %33 = arith.subf %31, %32 : vector<128x128xf32>
      %34 = math.absf %33 : vector<128x128xf32>
      %cst_15 = arith.constant 1.000000e+00 : f32
      %35 = vector.broadcast %cst_15 : f32 to vector<128x128xf32>
      %36 = arith.subf %35, %34 : vector<128x128xf32>
      %cst_16 = arith.constant 0.000000e+00 : f32
      %37 = vector.broadcast %cst_16 : f32 to vector<128x128xf32>
      %38 = arith.maximumf %37, %36 : vector<128x128xf32>
      %39 = arith.mulf %38, %13 : vector<128x128xf32>
      %c128_i32 = arith.constant 128 : i32
      %40 = arith.muli %arg10, %c128_i32 : i32
      %41 = tpu.assume_multiple %40, 128 : i32
      %c0_17 = arith.constant 0 : index
      %c0_18 = arith.constant 0 : index
      %42 = arith.index_cast %41 : i32 to index
      %43 = vector.load %arg8[%c0_17, %c0_18, %42] : memref<1x8x256xf32, #tpu.memory_space<vmem>>, vector<1x8x128xf32>
      %44 = vector.shape_cast %43 : vector<1x8x128xf32> to vector<8x128xf32>
      %c0_19 = arith.constant 0 : index
      %c0_20 = arith.constant 0 : index
      %c0_21 = arith.constant 0 : index
      %45 = vector.load %arg9[%c0_19, %c0_20, %c0_21] : memref<1x8x128xf32, #tpu.memory_space<vmem>>, vector<1x8x128xf32>
      %46 = vector.shape_cast %45 : vector<1x8x128xf32> to vector<8x128xf32>
      %cst_22 = arith.constant dense<0.000000e+00> : vector<8x128xf32>
      %47 = tpu.matmul %44, %39, %cst_22 {dimension_numbers = #tpu.dot_dimension_numbers<[1], [0], [0], [1], [0, 0, 1, 1], [], []>} : vector<8x128xf32>, vector<128x128xf32>, vector<8x128xf32> -> vector<8x128xf32>
      %48 = arith.addf %46, %47 : vector<8x128xf32>
      %c0_23 = arith.constant 0 : index
      %c0_24 = arith.constant 0 : index
      %c0_25 = arith.constant 0 : index
      %49 = vector.load %arg9[%c0_23, %c0_24, %c0_25] : memref<1x8x128xf32, #tpu.memory_space<vmem>>, vector<1x8x128xf32>
      %50 = vector.shape_cast %49 : vector<1x8x128xf32> to vector<8x128xf32>
      %51 = vector.shape_cast %48 : vector<8x128xf32> to vector<1x8x128xf32>
      tpu.vector_store %arg9[%c0_23, %c0_24, %c0_25], %51 {strides = array<i32>} : memref<1x8x128xf32, #tpu.memory_space<vmem>>, vector<1x8x128xf32>,
    }
    return
  }
  func.func @transform_0(%arg0: i32, %arg1: i32, %arg2: memref<4x2xi32, #tpu.memory_space<smem>>, %arg3: memref<4x2xi32, #tpu.memory_space<smem>>) -> (i32, i32, i32) {
    %c0_i32 = arith.constant 0 : i32
    %c0_i32_0 = arith.constant 0 : i32
    return %arg0, %c0_i32, %arg1 : i32, i32, i32
  }
  func.func @transform_1(%arg0: i32, %arg1: i32, %arg2: memref<4x2xi32, #tpu.memory_space<smem>>, %arg3: memref<4x2xi32, #tpu.memory_space<smem>>) -> (i32, i32, i32) {
    %c0_i32 = arith.constant 0 : i32
    %c0_i32_0 = arith.constant 0 : i32
    return %arg0, %c0_i32, %arg1 : i32, i32, i32
  }
  func.func @transform_2(%arg0: i32, %arg1: i32, %arg2: memref<4x2xi32, #tpu.memory_space<smem>>, %arg3: memref<4x2xi32, #tpu.memory_space<smem>>) -> (i32, i32) {
    %c0_i32 = arith.constant 0 : i32
    %c0_i32_0 = arith.constant 0 : i32
    %c0_i32_1 = arith.constant 0 : i32
    return %c0_i32, %c0_i32_0 : i32, i32
  }
  func.func @transform_3(%arg0: i32, %arg1: i32, %arg2: memref<4x2xi32, #tpu.memory_space<smem>>, %arg3: memref<4x2xi32, #tpu.memory_space<smem>>) -> (i32, i32) {
    %c0_i32 = arith.constant 0 : i32
    %c0_i32_0 = arith.constant 0 : i32
    %c0_i32_1 = arith.constant 0 : i32
    return %c0_i32, %c0_i32_0 : i32, i32
  }
  func.func @transform_4(%arg0: i32, %arg1: i32, %arg2: memref<4x2xi32, #tpu.memory_space<smem>>, %arg3: memref<4x2xi32, #tpu.memory_space<smem>>) -> (i32, i32, i32) {
    %c0_i32 = arith.constant 0 : i32
    %c0_i32_0 = arith.constant 0 : i32
    %c0_i32_1 = arith.constant 0 : i32
    return %arg0, %c0_i32, %c0_i32_0 : i32, i32, i32
  }
  func.func @transform_5(%arg0: i32, %arg1: i32, %arg2: memref<4x2xi32, #tpu.memory_space<smem>>, %arg3: memref<4x2xi32, #tpu.memory_space<smem>>) -> (i32, i32, i32) {
    %c0_i32 = arith.constant 0 : i32
    %c0_i32_0 = arith.constant 0 : i32
    return %arg0, %c0_i32, %arg1 : i32, i32, i32
  }
}

</mosaic_0001>

<bundles_post_ra>
// kernel: tpu_custom_call.1
= control target key start
LH: loop header
LB: loop body
LE: loop exit
PB: predicated region body
PF: predicated region fallthrough
CT: control target
= control target key end

     0   :  { %s1682_s0 = inlined_call_operand.vmem [shape: s32[4,2], index: 0, kind: input, shape index: {}]   ;;  %s1683_s2 = inlined_call_operand.vmem [shape: f32[4,1,256], index: 2, kind: input, shape index: {}]   ;;  %s1684_s3 = inlined_call_operand.vmem [shape: f32[4,1,256], index: 3, kind: input, shape index: {}]   ;;  %s1685_s4 = inlined_call_operand.vmem [shape: f32[128,1], index: 4, kind: input, shape index: {}]   ;;  %s1686_s5 = inlined_call_operand.vmem [shape: f32[128,1], index: 5, kind: input, shape index: {}]   ;;  %s1687_s6 = inlined_call_operand.vmem [shape: f32[4,8,256], index: 6, kind: input, shape index: {}]   ;;  %s1688_s7 = inlined_call_operand.hbm [shape: f32[4,8,256], index: 7, kind: output, shape index: {}]   ;;  %s1689_s1 = inlined_call_operand.vmem [shape: s32[4,2], index: 1, kind: input, shape index: {}]  }
   0x1   :  { %1693 = sst [smem:[#allocation11_spill]] %s1684_s3  ;;  %s12_s26 = sshll.u32 %s1682_s0, 4  ;;  %s13_s26 = int_to_ptr.vmem [resolvable:$true] %s12_s26 }
   0x2   :  { %1694 = sst [smem:[#allocation12_spill]] %s1687_s6  ;;  %s16_s29 = sshll.u32 %s1689_s1, 4  ;;  %s17_s29 = int_to_ptr.vmem [resolvable:$true] %s16_s29 }
   0x3   :  { %s1084_s30 = scalar_lea.vmem %s13_s26, 64  ;;  %p1089_p1 = scmp.lt.s32.totalorder %s13_s26, %s13_s26 }
   0x4   :  { %p1085_p0 = scmp.ne.s32.totalorder %s13_s26, %s1084_s30  ;;  %p1090_p2 = scmp.lt.s32.totalorder %s1084_s30, %s1084_s30 }
   0x6   :  { %p1091_p3 = por %p1090_p2, %p1089_p1 }
   0x8   :  { %p1092_p4 = pnand %p1091_p3, %p1085_p0 }
   0xa   :  { %1095 = shalt.err (!%p1092_p4)  }
   0xb   :  { %s1214_s8 = smov [#allocation3]   ;;  %s1096_s9 = scalar_lea.vmem %s17_s29, 64 }
   0xc   :  { %15 = dma.vmem_to_smem %s13_s26, 64, %s1214_s8, [#allocation2] }
   0xd   :  { %p1097_p5 = scmp.ne.s32.totalorder %s17_s29, %s1096_s9  ;;  %p1101_p6 = scmp.lt.s32.totalorder %s17_s29, %s17_s29 }
   0xe   :  { %p1102_p7 = scmp.lt.s32.totalorder %s1096_s9, %s1096_s9 }
  0x10   :  { %p1103_p8 = por %p1102_p7, %p1101_p6 }
  0x12   :  { %p1104_p9 = pnand %p1103_p8, %p1097_p5 }
  0x14   :  { %1107 = shalt.err (!%p1104_p9)  }
  0x15   :  { %s1215_s0 = smov [#allocation4]  }
  0x16   :  { %19 = dma.vmem_to_smem %s17_s29, 64, %s1215_s0, [#allocation2] }
  0x17   :  { %1172 = dma.done.wait [#allocation2], 128 }
  0x18   :  { %1173 = vsyncadd [#allocation2], 4294967168 }
  0x19   :  { %21 = sfence }
  0x1a   :  { %22 = vsyncpa [#allocation6], 0 }
  0x1b   :  { %24 = vsyncpa [#allocation6 + $0x1], 0  ;;  %s1269_s1 = smov 0   ;;  %s1271_s10 = smov 0  }
  0x1c   :  { %s1273_s11 = smov 0   ;;  %s1275_s12 = smov 0  }
  0x1d   :  { %s1277_s13 = smov 0   ;;  %s1279_s14 = smov 0  }
  0x1e   :  { %s1281_s15 = smov 0   ;;  %s1283_s16 = smov 0  }
  0x1f LB: > { %s895_s17 = sadd.s32 4294967295, %s1208_s16   ;;  %s896_s18 = sadd.s32 4294967294, %s1208_s16   ;;  %s1208_s16 = sphi %s1283_s16, %s30_s16   ;;  %s1204_s15 = sphi %s1281_s15, %s1710_s15   ;;  %s1200_s14 = sphi %s1279_s14, %s1709_s14   ;;  %s1196_s13 = sphi %s1277_s13, %s1708_s13   ;;  %s1192_s12 = sphi %s1275_s12, %s1707_s12   ;;  %s1188_s11 = sphi %s1273_s11, %s1706_s11   ;;  %s1184_s10 = sphi %s1271_s10, %s1705_s10   ;;  %s1180_s1 = sphi %s1269_s1, %s1704_s1  }
  0x20   : > { %s39_s19 = sadd.s32 1, %s1200_s14  ;;  %s42_s20 = sadd.s32 1, %s1204_s15 }
  0x21   : > { %p40_p10 = scmp.ge.s32.totalorder %s39_s19, 2  ;;  %p185_p11 = scmp.ne.s32.totalorder %s1188_s11, %s1184_s10 }
  0x22   : > { %p186_p12 = scmp.eq.s32.totalorder %s895_s17, 7  ;;  %p191_p1 = scmp.ne.s32.totalorder %s1184_s10, %s1180_s1 }
  0x23   : > { %s1712_s19 = smov (%p40_p10, %s39_s19), 0  ;;  %s1714_s20 = smov (!%p40_p10, %s42_s20), %s1204_s15 }
  0x24   : > { %1695 = sst [smem:[#allocation9_spill]] %s1712_s19  ;;  %s171_s21 = ssub.s32 %s1200_s14, %s1712_s19 }
  0x25   : > { %p1320_p13 = por %p186_p12, %p185_p11  ;;  %p44_p0 = scmp.ge.s32.totalorder %s1714_s20, 4 }
  0x26   : > { %p192_p2 = scmp.eq.s32.totalorder %s896_s18, 7  ;;  %p899_p3 = scmp.ge.s32.totalorder %s1208_s16, 1 }
  0x27   : > { %s1716_s20 = smov (%p44_p0, %s1714_s20), 0  ;;  %p244_p5 = scmp.lt.s32.totalorder %s1208_s16, 9 }
  0x28   : > { %1697 = sst [smem:[#allocation10_spill]] %s1716_s20  ;;  %p1329_p4 = por %p192_p2, %p191_p1 }
  0x29   : > { %s170_s24 = ssub.s32 %s1204_s15, %s1716_s20  ;;  %s175_s25 = sadd.s32 1, %s1188_s11 }
  0x2a   : > { %s172_s26 = sor.u32 %s171_s21, %s170_s24  ;;  %p245_p6 = pnand %p899_p3, %p244_p5 }
  0x2b   : > { %p173_p7 = scmp.eq.s32.totalorder %s172_s26, 0  ;;  %v309_v0 = vld [vmem:[%s1685_s4 + $0x10] sm:$0xff] (!%p245_p6)  ;;  %v307_v1 = vld [vmem:[%s1685_s4] sm:$0xff] (!%p245_p6)  ;;  %p286_p8 = scmp.lt.s32.totalorder (!%p245_p6), %s1196_s13, 3  ;;  %v1216_v2 = vmov (!%p245_p6), 0   ;;  %v310_v3 = vld [vmem:[%s1685_s4 + $0x18] sm:$0xff] (!%p245_p6) }
  0x2c   : > { %248 = sbr.rel (%p245_p6) target bundleno = 631 (0x277), region = 40  ;;  %p288_p9 = scmp.lt.s32.totalorder (!%p245_p6), %s1192_s12, 1  ;;  %1081 = vset.pattern.permute.xlu1 (!%p245_p6), %v1216_v2  ;;  %1080 = vset.pattern.permute.xlu0 (!%p245_p6), %v1216_v2  ;;  %v308_v4 = vld [vmem:[%s1685_s4 + $0x8] sm:$0xff] (!%p245_p6)  ;;  %v311_v6 = vld [vmem:[%s1685_s4 + $0x20] sm:$0xff] (!%p245_p6)  ;;  %v314_v8 = vld [vmem:[%s1685_s4 + $0x38] sm:$0xff] (!%p245_p6)  ;;  %v1217_v21 = vmov (!%p245_p6), 0.0  }
  0x2d   : > { %s1338_s27 = scalar_select %p173_p7, %s1188_s11, %s175_s25  }
  0x2e   : > { %357 = vperm.xlu1 (!%p245_p6), %1081, %v309_v0   ;;  %347 = vperm.xlu0 (!%p245_p6), %1080, %v307_v1   ;;  %s1699_s6 = sld [smem:[#allocation12_spill]] (!%p245_p6)  ;;  %s1700_s3 = sld [smem:[#allocation11_spill]] (!%p245_p6)  ;;  %v312_v5 = vld [vmem:[%s1685_s4 + $0x28] sm:$0xff] (!%p245_p6)  ;;  %v313_v9 = vld [vmem:[%s1685_s4 + $0x30] sm:$0xff] (!%p245_p6)  ;;  %v315_v11 = vld [vmem:[%s1685_s4 + $0x40] sm:$0xff] (!%p245_p6) }
  0x2f   : > { %v316_v10 = vld [vmem:[%s1685_s4 + $0x48] sm:$0xff] (!%p245_p6)  ;;  %v318_v12 = vld [vmem:[%s1685_s4 + $0x58] sm:$0xff] (!%p245_p6)  ;;  %v317_v13 = vld [vmem:[%s1685_s4 + $0x50] sm:$0xff] (!%p245_p6)  ;;  %s490_s19 = sshra.s32 (!%p245_p6), %s1192_s12, 7 }
  0x30   : > { %v320_v14 = vld [vmem:[%s1685_s4 + $0x68] sm:$0xff] (!%p245_p6)  ;;  %v319_v15 = vld [vmem:[%s1685_s4 + $0x60] sm:$0xff] (!%p245_p6)  ;;  %v322_v16 = vld [vmem:[%s1685_s4 + $0x78] sm:$0xff] (!%p245_p6)  ;;  %s492_s18 = sadd.s32 (!%p245_p6), %s1196_s13, %s490_s19 }
  0x31   : > { %v321_v17 = vld [vmem:[%s1685_s4 + $0x70] sm:$0xff] (!%p245_p6)  ;;  %s906_s21 = sshll.u32 (!%p245_p6), %s492_s18, 7  ;;  %v1416_v18 = vld [vmem:[%s1686_s5] sm:$0xff] (!%p245_p6)  ;;  %v1421_v19 = vld [vmem:[%s1686_s5 + $0x8] sm:$0xff] (!%p245_p6) }
  0x32   : > { %362 = vperm.xlu1 (!%p245_p6), %1081, %v310_v3   ;;  %352 = vperm.xlu0 (!%p245_p6), %1080, %v308_v4   ;;  %v1426_v20 = vld [vmem:[%s1686_s5 + $0x10] sm:$0xff] (!%p245_p6)  ;;  %v1437_v22 = vld [vmem:[%s1686_s5 + $0x18] sm:$0xff] (!%p245_p6)  ;;  %v1442_v23 = vld [vmem:[%s1686_s5 + $0x20] sm:$0xff] (!%p245_p6) }
  0x33   : > { %s287_s9 = scalar_select %p286_p8, %s1196_s13, 3  ;;  %v1447_v24 = vld [vmem:[%s1686_s5 + $0x28] sm:$0xff]  ;;  %v1452_v25 = vld [vmem:[%s1686_s5 + $0x30] sm:$0xff]  ;;  %v1457_v26 = vld [vmem:[%s1686_s5 + $0x38] sm:$0xff] }
  0x34   : > { %s289_s24 = scalar_select %p288_p9, %s1192_s12, 1  ;;  %v1462_v27 = vld [vmem:[%s1686_s5 + $0x40] sm:$0xff]  ;;  %v1467_v28 = vld [vmem:[%s1686_s5 + $0x48] sm:$0xff]  ;;  %v1472_v29 = vld [vmem:[%s1686_s5 + $0x50] sm:$0xff] }
  0x35   : > { %s901_s25 = sshll.u32 %s287_s9, 1  ;;  %s916_s26 = sshll.u32 %s287_s9, 4  ;;  %v1477_v30 = vld [vmem:[%s1686_s5 + $0x58] sm:$0xff]  ;;  %v1482_v31 = vld [vmem:[%s1686_s5 + $0x60] sm:$0xff]  ;;  %v1487_v32 = vld [vmem:[%s1686_s5 + $0x68] sm:$0xff] }
  0x36   : > { %s1356_s28 = sadd.s32 %s901_s25, %s289_s24  ;;  %s1361_s8 = scalar_lea.vmem %s1699_s6, %s916_s26  ;;  %372 = vperm.xlu1 %1081, %v312_v5   ;;  %367 = vperm.xlu0 %1080, %v311_v6   ;;  %v1492_v33 = vld [vmem:[%s1686_s5 + $0x70] sm:$0xff]  ;;  %v1497_v34 = vld [vmem:[%s1686_s5 + $0x78] sm:$0xff] }
  0x37   : > { %s299_s17 = scalar_lea.vmem %s1700_s3, %s1356_s28  ;;  %s495_s9 = sand.u32 127, %s1192_s12 }
  0x38   : > { %v1373_v7 = vld [vmem:[%s299_s17] ss:$0 sm:$0xff]  ;;  %s496_s24 = sadd.s32 %s906_s21, %s495_s9  ;;  %s1692_s26 = sand.u32 1, %s1184_s10  }
  0x39   : > { %s1408_s25 = sld [smem:[#allocation4 + %s496_s24]]  ;;  %s900_s29 = sshll.u32 %s1692_s26, 3 }
  0x3a   : > { %382 = vperm.xlu1 %1081, %v314_v8   ;;  %377 = vperm.xlu0 %1080, %v313_v9   ;;  %s1428_s17 = scalar_lea.vmem [#allocation5], %s900_s29  ;;  %s1431_s18 = sld [smem:[#allocation3 + %s496_s24]]  }
  0x3b   : > { %489 = vst [vmem:[%s1428_s17] sm:$0xff] %v1217_v21  ;;  %s292_s26 = scalar_lea.vmem %s1683_s2, %s1356_s28 }
  0x3c   : > { %v1503_v35 = vld [vmem:[%s292_s26] ss:$0 sm:$0xff] }
  0x3e   : > { %392 = vperm.xlu1 %1081, %v316_v10   ;;  %387 = vperm.xlu0 %1080, %v315_v11  }
  0x3f   : > { %s499_s3 = sadd.s32 1, %s1408_s25 }
  0x40   : > { %p847_p10 = scmp.ge.s32.totalorder %s1431_s18, %s499_s3 }
  0x42   : > { %402 = vperm.xlu1 %1081, %v318_v12   ;;  %397 = vperm.xlu0 %1080, %v317_v13  }
  0x46   : > { %412 = vperm.xlu1 %1081, %v320_v14   ;;  %407 = vperm.xlu0 %1080, %v319_v15  }
  0x4a   : > { %422 = vperm.xlu1 %1081, %v322_v16   ;;  %417 = vperm.xlu0 %1080, %v321_v17  }
  0xad   : > { %v358_v36 = vpop.permute.xlu1 %357  ;;  %v348_v37 = vpop.permute.xlu0 %347 }
  0xae   : > { %v427_v38 = vsub.f32 %v1503_v35, %v358_v36  ;;  %v425_v39 = vsub.f32 %v1503_v35, %v348_v37 }
  0xb0   : > { %v443_v40 = vand.u32 2147483647, %v427_v38  ;;  %v441_v41 = vand.u32 2147483647, %v425_v39 }
  0xb1   : > { %v363_v42 = vpop.permute.xlu1 %362  ;;  %v353_v43 = vpop.permute.xlu0 %352 }
  0xb2   : > { %v459_v44 = vsub.f32 1.0, %v443_v40  ;;  %v457_v45 = vsub.f32 1.0, %v441_v41  ;;  %v428_v46 = vsub.f32 %v1503_v35, %v363_v42  ;;  %v426_v47 = vsub.f32 %v1503_v35, %v353_v43 }
  0xb4   : > { %v1509_v48 = vmax.f32 %v459_v44, 0.0  ;;  %v1511_v49 = vmax.f32 %v457_v45, 0.0  ;;  %v444_v50 = vand.u32 2147483647, %v428_v46  ;;  %v442_v51 = vand.u32 2147483647, %v426_v47 }
  0xb5   : > { %v373_v52 = vpop.permute.xlu1 %372  ;;  %v368_v53 = vpop.permute.xlu0 %367 }
  0xb6   : > { %v460_v54 = vsub.f32 1.0, %v444_v50  ;;  %v458_v55 = vsub.f32 1.0, %v442_v51  ;;  %v430_v56 = vsub.f32 %v1503_v35, %v373_v52  ;;  %v429_v57 = vsub.f32 %v1503_v35, %v368_v53 }
  0xb8   : > { %v1515_v58 = vmax.f32 %v460_v54, 0.0  ;;  %v1517_v59 = vmax.f32 %v458_v55, 0.0  ;;  %v446_v60 = vand.u32 2147483647, %v430_v56  ;;  %v445_v61 = vand.u32 2147483647, %v429_v57 }
  0xb9   : > { %v383_v62 = vpop.permute.xlu1 %382  ;;  %v378_v63 = vpop.permute.xlu0 %377 }
  0xba   : > { %v462_v0 = vsub.f32 1.0, %v446_v60  ;;  %v461_v1 = vsub.f32 1.0, %v445_v61  ;;  %v432_v2 = vsub.f32 %v1503_v35, %v383_v62  ;;  %v431_v3 = vsub.f32 %v1503_v35, %v378_v63 }
  0xbc   : > { %v1521_v4 = vmax.f32 %v462_v0, 0.0  ;;  %v1523_v5 = vmax.f32 %v461_v1, 0.0  ;;  %v448_v6 = vand.u32 2147483647, %v432_v2  ;;  %v447_v8 = vand.u32 2147483647, %v431_v3 }
  0xbd   : > { %v393_v9 = vpop.permute.xlu1 %392  ;;  %v388_v10 = vpop.permute.xlu0 %387 }
  0xbe   : > { %v464_v11 = vsub.f32 1.0, %v448_v6  ;;  %v463_v12 = vsub.f32 1.0, %v447_v8  ;;  %v434_v13 = vsub.f32 %v1503_v35, %v393_v9  ;;  %v433_v14 = vsub.f32 %v1503_v35, %v388_v10 }
  0xc0   : > { %v1527_v15 = vmax.f32 %v464_v11, 0.0  ;;  %v1529_v16 = vmax.f32 %v463_v12, 0.0  ;;  %v450_v17 = vand.u32 2147483647, %v434_v13  ;;  %v449_v21 = vand.u32 2147483647, %v433_v14 }
  0xc1   : > { %v403_v36 = vpop.permute.xlu1 %402  ;;  %v398_v37 = vpop.permute.xlu0 %397 }
  0xc2   : > { %v466_v38 = vsub.f32 1.0, %v450_v17  ;;  %v465_v39 = vsub.f32 1.0, %v449_v21  ;;  %v436_v40 = vsub.f32 %v1503_v35, %v403_v36  ;;  %v435_v41 = vsub.f32 %v1503_v35, %v398_v37 }
  0xc4   : > { %v1533_v42 = vmax.f32 %v466_v38, 0.0  ;;  %v1535_v43 = vmax.f32 %v465_v39, 0.0  ;;  %v452_v44 = vand.u32 2147483647, %v436_v40  ;;  %v451_v45 = vand.u32 2147483647, %v435_v41 }
  0xc5   : > { %v413_v46 = vpop.permute.xlu1 %412  ;;  %v408_v47 = vpop.permute.xlu0 %407 }
  0xc6   : > { %v468_v50 = vsub.f32 1.0, %v452_v44  ;;  %v467_v51 = vsub.f32 1.0, %v451_v45  ;;  %v438_v52 = vsub.f32 %v1503_v35, %v413_v46  ;;  %v437_v53 = vsub.f32 %v1503_v35, %v408_v47 }
  0xc8   : > { %v1539_v54 = vmax.f32 %v468_v50, 0.0  ;;  %v1541_v55 = vmax.f32 %v467_v51, 0.0  ;;  %v454_v56 = vand.u32 2147483647, %v438_v52  ;;  %v453_v57 = vand.u32 2147483647, %v437_v53 }
  0xc9   : > { %v423_v60 = vpop.permute.xlu1 %422  ;;  %v418_v61 = vpop.permute.xlu0 %417 }
  0xca   : > { %v470_v62 = vsub.f32 1.0, %v454_v56  ;;  %v469_v63 = vsub.f32 1.0, %v453_v57  ;;  %v440_v0 = vsub.f32 %v1503_v35, %v423_v60  ;;  %v439_v1 = vsub.f32 %v1503_v35, %v418_v61  ;;  %848 = sbr.rel (%p847_p10) target bundleno = 605 (0x25d), region = 83 }
  0xcc   : > { %v1545_v2 = vmax.f32 %v470_v62, 0.0  ;;  %v1547_v3 = vmax.f32 %v469_v63, 0.0  ;;  %v456_v6 = vand.u32 2147483647, %v440_v0  ;;  %v455_v8 = vand.u32 2147483647, %v439_v1 }
  0xce   : > { %v472_v9 = vsub.f32 1.0, %v456_v6  ;;  %v471_v10 = vsub.f32 1.0, %v455_v8 }
  0xd0   : > { %v1549_v11 = vmax.f32 %v472_v9, 0.0  ;;  %v1551_v12 = vmax.f32 %v471_v10, 0.0 }
  0xd1 LB: >> { %v1218_v35 = vmov 0   ;;  %s907_s28 = sshll.u32 %s1212_s18, 3  ;;  %v1219_v47 = vmov 0.0|0.0   ;;  %vm1220_vm0 = vmmov 0   ;;  %v1221_v56 = vmov 0.0   ;;  %s909_s6 = sshll.u32 %s1212_s18, 7  ;;  %s1212_s18 = sphi %s1431_s18, %s503_s18  }
  0xd2   : >> { %1083 = vset.pattern.permute.xlu1 %v1218_v35  ;;  %1082 = vset.pattern.permute.xlu0 %v1218_v35  ;;  %s507_s24 = scvt.s32.f32 %s907_s28  ;;  %s692_s21 = sshra.s32 %s909_s6, 7 }
  0xd3   : >> { %969 = vmatprep.subr.bf16.mxu0 %v1219_v47  ;;  %966 = vmatprep.mubr.msk.f32.mxu0 %vm1220_vm0, %v1221_v56  ;;  %s910_s9 = sshll.u32 %s692_s21, 3  ;;  %s503_s18 = sadd.s32 1, %s1212_s18  }
  0xd4   : >> { %v508_v13 = vstv %s507_s24  ;;  %s695_s20 = scalar_lea.vmem %s1361_s8, %s910_s9  ;;  %p502_p11 = scmp.ge.s32.totalorder %s503_s18, %s499_s3 }
  0xd5   : >> { %v511_v14 = vadd.f32 %v508_v13, %v1426_v20  ;;  %v509_v17 = vadd.f32 %v508_v13, %v1416_v18  ;;  %v512_v21 = vadd.f32 %v508_v13, %v1437_v22  ;;  %v510_v36 = vadd.f32 %v508_v13, %v1421_v19 }
  0xd6   : >> { %v514_v37 = vadd.f32 %v508_v13, %v1447_v24  ;;  %v513_v38 = vadd.f32 %v508_v13, %v1442_v23  ;;  %v516_v39 = vadd.f32 %v508_v13, %v1457_v26  ;;  %v515_v40 = vadd.f32 %v508_v13, %v1452_v25 }
  0xd7   : >> { %543 = vperm.xlu1 %1083, %v511_v14   ;;  %533 = vperm.xlu0 %1082, %v509_v17   ;;  %v518_v41 = vadd.f32 %v508_v13, %v1467_v28  ;;  %v517_v44 = vadd.f32 %v508_v13, %v1462_v27  ;;  %v520_v45 = vadd.f32 %v508_v13, %v1477_v30 }
  0xd8   : >> { %v519_v46 = vadd.f32 %v508_v13, %v1472_v29  ;;  %v522_v50 = vadd.f32 %v508_v13, %v1487_v32  ;;  %v521_v51 = vadd.f32 %v508_v13, %v1482_v31  ;;  %v524_v52 = vadd.f32 %v508_v13, %v1497_v34 }
  0xd9   : >> { %v523_v53 = vadd.f32 %v508_v13, %v1492_v33 }
  0xdb   : >> { %548 = vperm.xlu1 %1083, %v512_v21   ;;  %538 = vperm.xlu0 %1082, %v510_v36  }
  0xdf   : >> { %558 = vperm.xlu1 %1083, %v514_v37   ;;  %553 = vperm.xlu0 %1082, %v513_v38  }
  0xe3   : >> { %568 = vperm.xlu1 %1083, %v516_v39   ;;  %563 = vperm.xlu0 %1082, %v515_v40  }
  0xe7   : >> { %578 = vperm.xlu1 %1083, %v518_v41   ;;  %573 = vperm.xlu0 %1082, %v517_v44  }
  0xeb   : >> { %588 = vperm.xlu1 %1083, %v520_v45   ;;  %583 = vperm.xlu0 %1082, %v519_v46  }
  0xef   : >> { %598 = vperm.xlu1 %1083, %v522_v50   ;;  %593 = vperm.xlu0 %1082, %v521_v51  }
  0xf3   : >> { %608 = vperm.xlu1 %1083, %v524_v52   ;;  %603 = vperm.xlu0 %1082, %v523_v53  }
 0x156   : >> { %v544_v57 = vpop.permute.xlu1 %543  ;;  %v534_v60 = vpop.permute.xlu0 %533 }
 0x157   : >> { %v613_v61 = vsub.f32 %v1373_v7, %v544_v57  ;;  %v611_v62 = vsub.f32 %v1373_v7, %v534_v60 }
 0x159   : >> { %v629_v63 = vand.u32 2147483647, %v613_v61  ;;  %v627_v0 = vand.u32 2147483647, %v611_v62 }
 0x15a   : >> { %v549_v1 = vpop.permute.xlu1 %548  ;;  %v539_v6 = vpop.permute.xlu0 %538 }
 0x15b   : >> { %v643_v8 = vsub.f32 1.0, %v627_v0  ;;  %v614_v9 = vsub.f32 %v1373_v7, %v549_v1  ;;  %v612_v10 = vsub.f32 %v1373_v7, %v539_v6  ;;  %v645_v35 = vsub.f32 1.0, %v629_v63 }
 0x15d   : >> { %v630_v13 = vand.u32 2147483647, %v614_v9  ;;  %v628_v14 = vand.u32 2147483647, %v612_v10  ;;  %v659_v36 = vmax.f32 %v643_v8, 0.0  ;;  %v661_v39 = vmax.f32 %v645_v35, 0.0 }
 0x15e   : >> { %v559_v17 = vpop.permute.xlu1 %558  ;;  %v554_v21 = vpop.permute.xlu0 %553 }
 0x15f   : >> { %v646_v37 = vsub.f32 1.0, %v630_v13  ;;  %v644_v38 = vsub.f32 1.0, %v628_v14  ;;  %v616_v40 = vsub.f32 %v1373_v7, %v559_v17  ;;  %v615_v41 = vsub.f32 %v1373_v7, %v554_v21 }
 0x160   : >> { %v675_v53 = vmul.f32 %v659_v36, %v1511_v49  ;;  %v677_v61 = vmul.f32 %v661_v39, %v1509_v48 }
 0x161   : >> { %v662_v44 = vmax.f32 %v646_v37, 0.0  ;;  %v660_v45 = vmax.f32 %v644_v38, 0.0  ;;  %v632_v46 = vand.u32 2147483647, %v616_v40  ;;  %v631_v50 = vand.u32 2147483647, %v615_v41 }
 0x162   : >> { %v569_v51 = vpop.permute.xlu1 %568  ;;  %v564_v52 = vpop.permute.xlu0 %563 }
 0x163   : >> { %v676_v56 = vmul.f32 %v660_v45, %v1517_v59  ;;  %v618_v57 = vsub.f32 %v1373_v7, %v569_v51  ;;  %v617_v60 = vsub.f32 %v1373_v7, %v564_v52  ;;  %v678_v62 = vmul.f32 %v662_v44, %v1515_v58 }
 0x164   : >> { %v648_v63 = vsub.f32 1.0, %v632_v46  ;;  %v647_v0 = vsub.f32 1.0, %v631_v50 }
 0x165   : >> { %v634_v1 = vand.u32 2147483647, %v618_v57  ;;  %v633_v6 = vand.u32 2147483647, %v617_v60  ;;  %v970_v8 = vpack.c.bf16 %v676_v56, %v675_v53  ;;  %v973_v39 = vpack.c.bf16 %v678_v62, %v677_v61 }
 0x166   : >> { %v664_v9 = vmax.f32 %v648_v63, 0.0  ;;  %v663_v10 = vmax.f32 %v647_v0, 0.0  ;;  %v579_v35 = vpop.permute.xlu1 %578  ;;  %v574_v13 = vpop.permute.xlu0 %573 }
 0x167   : >> { %v650_v14 = vsub.f32 1.0, %v634_v1  ;;  %v649_v17 = vsub.f32 1.0, %v633_v6  ;;  %v620_v21 = vsub.f32 %v1373_v7, %v579_v35  ;;  %v619_v36 = vsub.f32 %v1373_v7, %v574_v13  ;;  %971 = vmatpush3.bf16.msra.mxu0 %v970_v8 }
 0x168   : >> { %v680_v37 = vmul.f32 %v664_v9, %v1521_v4  ;;  %v679_v38 = vmul.f32 %v663_v10, %v1523_v5  ;;  %972 = vmatprep.subr.bf16.mxu0 %v1219_v47 }
 0x169   : >> { %v666_v40 = vmax.f32 %v650_v14, 0.0  ;;  %v665_v41 = vmax.f32 %v649_v17, 0.0  ;;  %v636_v44 = vand.u32 2147483647, %v620_v21  ;;  %v635_v45 = vand.u32 2147483647, %v619_v36 }
 0x16a   : >> { %v589_v46 = vpop.permute.xlu1 %588  ;;  %v584_v50 = vpop.permute.xlu0 %583  ;;  %v976_v57 = vpack.c.bf16 %v680_v37, %v679_v38 }
 0x16b   : >> { %v652_v51 = vsub.f32 1.0, %v636_v44  ;;  %v651_v52 = vsub.f32 1.0, %v635_v45  ;;  %974 = vmatpush3.bf16.msra.mxu0 %v973_v39  ;;  %v622_v53 = vsub.f32 %v1373_v7, %v589_v46  ;;  %v621_v56 = vsub.f32 %v1373_v7, %v584_v50 }
 0x16c   : >> { %975 = vmatprep.subr.bf16.mxu0 %v1219_v47  ;;  %v682_v60 = vmul.f32 %v666_v40, %v1527_v15  ;;  %v681_v61 = vmul.f32 %v665_v41, %v1529_v16 }
 0x16d   : >> { %v668_v62 = vmax.f32 %v652_v51, 0.0  ;;  %v667_v63 = vmax.f32 %v651_v52, 0.0  ;;  %v638_v0 = vand.u32 2147483647, %v622_v53  ;;  %v637_v1 = vand.u32 2147483647, %v621_v56 }
 0x16e   : >> { %v599_v6 = vpop.permute.xlu1 %598  ;;  %v594_v8 = vpop.permute.xlu0 %593  ;;  %v979_v37 = vpack.c.bf16 %v682_v60, %v681_v61 }
 0x16f   : >> { %v624_v9 = vsub.f32 %v1373_v7, %v599_v6  ;;  %v623_v10 = vsub.f32 %v1373_v7, %v594_v8  ;;  %977 = vmatpush3.bf16.msra.mxu0 %v976_v57  ;;  %v684_v35 = vmul.f32 %v668_v62, %v1533_v42  ;;  %v683_v13 = vmul.f32 %v667_v63, %v1535_v43 }
 0x170   : >> { %v654_v14 = vsub.f32 1.0, %v638_v0  ;;  %v653_v17 = vsub.f32 1.0, %v637_v1  ;;  %978 = vmatprep.subr.bf16.mxu0 %v1219_v47 }
 0x171   : >> { %v640_v21 = vand.u32 2147483647, %v624_v9  ;;  %v639_v36 = vand.u32 2147483647, %v623_v10  ;;  %v982_v53 = vpack.c.bf16 %v684_v35, %v683_v13 }
 0x172   : >> { %v670_v38 = vmax.f32 %v654_v14, 0.0  ;;  %v669_v39 = vmax.f32 %v653_v17, 0.0  ;;  %v609_v40 = vpop.permute.xlu1 %608  ;;  %v604_v41 = vpop.permute.xlu0 %603  ;;  %v696_v17 = vld [vmem:[%s695_s20] sm:$0xff] }
 0x173   : >> { %v656_v44 = vsub.f32 1.0, %v640_v21  ;;  %v655_v45 = vsub.f32 1.0, %v639_v36  ;;  %v626_v46 = vsub.f32 %v1373_v7, %v609_v40  ;;  %v625_v50 = vsub.f32 %v1373_v7, %v604_v41  ;;  %980 = vmatpush3.bf16.msra.mxu0 %v979_v37  ;;  %v697_v21 = vld [vmem:[%s1428_s17] sm:$0xff] }
 0x174   : >> { %v686_v51 = vmul.f32 %v670_v38, %v1539_v54  ;;  %v685_v52 = vmul.f32 %v669_v39, %v1541_v55  ;;  %981 = vmatprep.subr.bf16.mxu0 %v1219_v47 }
 0x175   : >> { %v672_v56 = vmax.f32 %v656_v44, 0.0  ;;  %v671_v57 = vmax.f32 %v655_v45, 0.0  ;;  %v642_v60 = vand.u32 2147483647, %v626_v46  ;;  %v641_v61 = vand.u32 2147483647, %v625_v50 }
 0x176   : >> { %v985_v0 = vpack.c.bf16 %v686_v51, %v685_v52 }
 0x177   : >> { %v658_v62 = vsub.f32 1.0, %v642_v60  ;;  %v657_v63 = vsub.f32 1.0, %v641_v61  ;;  %983 = vmatpush3.bf16.msra.mxu0 %v982_v53  ;;  %v688_v1 = vmul.f32 %v672_v56, %v1545_v2  ;;  %v687_v6 = vmul.f32 %v671_v57, %v1547_v3 }
 0x178   : >> { %984 = vmatprep.subr.bf16.mxu0 %v1219_v47 }
 0x179   : >> { %v674_v8 = vmax.f32 %v658_v62, 0.0  ;;  %v673_v9 = vmax.f32 %v657_v63, 0.0  ;;  %v988_v13 = vpack.c.bf16 %v688_v1, %v687_v6 }
 0x17b   : >> { %986 = vmatpush3.bf16.msra.mxu0 %v985_v0  ;;  %v690_v10 = vmul.f32 %v674_v8, %v1549_v11  ;;  %v689_v35 = vmul.f32 %v673_v9, %v1551_v12 }
 0x17c   : >> { %987 = vmatprep.subr.bf16.mxu0 %v1219_v47 }
 0x17d   : >> { %v991_v14 = vpack.c.bf16 %v690_v10, %v689_v35 }
 0x17f   : >> { %989 = vmatpush3.bf16.msra.mxu0 %v988_v13 }
 0x180   : >> { %990 = vmatprep.subr.bf16.mxu0 %v1219_v47 }
 0x183   : >> { %992 = vmatpush3.bf16.msra.mxu0 %v991_v14 }
 0x186   : >> { %967 = vmatmul.mubr.f32.vlgmr.msra.gmra.mrb[0].mxu0 %v696_v17 }
 0x256   : > { %505 = sbr.rel (!%p502_p11) target bundleno = 209 (0xd1), region = 89 }
 0x259   : >> { %v764_v36 = vpop.f32.mrb[0].mxu0 }
 0x25a   : >> { %v768_v37 = vadd.f32 %v764_v36, %v697_v21  ;;  %v968_v38 = vpop.f32.mrb[1].mxu0 }
 0x25c   : >> { %769 = vst [vmem:[%s1428_s17] sm:$0xff] %v768_v37 }
 0x25d PF: > { %s912_s30 = sshll.u32 %s1196_s13, 1  ;;  %s786_s19 = sshll.u32 %s1428_s17, 4  ;;  %s1631_s19 = int_to_ptr.vmem [resolvable:$true] %s786_s19 }
 0x25e   : > { %s782_s29 = sadd.s32 %s1192_s12, %s912_s30  ;;  %s1701_s24 = sand.u32 1, %s1184_s10  }
 0x25f   : > { %s913_s0 = sshll.u32 %s782_s29, 7  ;;  %s771_s8 = scalar_lea.sflag [#allocation6], %s1701_s24 }
 0x260   : > { %s784_s18 = scalar_lea.hbm %s1688_s7, %s913_s0  ;;  %s1108_s25 = scalar_lea.vmem %s1631_s19, 128 }
 0x261   : > { %p1109_p12 = scmp.ne.s32.totalorder %s1631_s19, %s1108_s25  ;;  %s1222_s13 = smov [#allocation5]  }
 0x262   : > { %s1112_s12 = sshll.u32 %s1222_s13, 4  ;;  %s1113_s12 = int_to_ptr.vmem [resolvable:$false] %s1112_s12 }
 0x263   : > { %p1110_p0 = pnand %p1109_p12, %p1320_p13  ;;  %s1114_s17 = scalar_lea.vmem %s1113_s12, 256 }
 0x264   : > { %p1115_p2 = scmp.lt.s32.totalorder %s1631_s19, %s1113_s12  ;;  %p1116_p3 = scmp.lt.s32.totalorder %s1114_s17, %s1108_s25 }
 0x265   : > { %p1111_p1 = pneg %p1110_p0 }
 0x266   : > { %p1117_p5 = por %p1116_p3, %p1115_p2 }
 0x268   : > { %p1118_p6 = pnand %p1117_p5, %p1111_p1 }
 0x26a   : > { %1121 = shalt.err (!%p1118_p6)
}
 0x26b   : > { %s1122_s3 = scalar_lea.hbm %s784_s18, 128  ;;  %s1126_s9 = scalar_lea.hbm %s1688_s7, 1024 }
 0x26c   : > { %p1123_p7 = scmp.ne.s32.totalorder %s784_s18, %s1122_s3  ;;  %p1127_p10 = scmp.lt.u32.totalorder %s784_s18, %s1688_s7 }
 0x26d   : > { %p1128_p11 = scmp.lt.u32.totalorder %s1126_s9, %s1122_s3  ;;  %p1130_p0 = scmp.lt.u32.totalorder %s1122_s3, %s784_s18 }
 0x26e   : > { %p1124_p8 = pnand %p1123_p7, %p1320_p13 }
 0x26f   : > { %p1129_p12 = por %p1128_p11, %p1127_p10 }
 0x270   : > { %p1125_p9 = pneg %p1124_p8 }
 0x271   : > { %p1131_p2 = por %p1130_p0, %p1129_p12 }
 0x273   : > { %p1132_p1 = pnand %p1131_p2, %p1125_p9 }
 0x275   : > { %1135 = shalt.err (!%p1132_p1)
}
 0x276   : > { %993 = dma.vmem_to_hbm [thread:$0]  (%p1320_p13), %s1631_s19, 128, %s784_s18, %s771_s8  }
 0x277 PF: > { %p999_p3 = scmp.ge.s32.totalorder %s1208_s16, 2  ;;  %s798_s29 = sand.u32 1, %s1180_s1  }
 0x278   : > { %s799_s0 = scalar_lea.sflag [#allocation6], %s798_s29 }
 0x279   : > { %p996_p5 = pnand %p999_p3, %p1329_p4 }
 0x27b   : > { %1175 = dma.done.wait (!%p996_p5), %s799_s0, 128  }
 0x27c   : > { %1177 = vsyncadd (!%p996_p5), %s799_s0, 4294967168  ;;  %s30_s16 = sadd.s32 1, %s1208_s16   ;;  %s1702_s22 = sld [smem:[#allocation9_spill]] }
 0x27d   : > { %p27_p6 = scmp.ge.s32.totalorder %s30_s16, 10   ;;  %s1703_s19 = sld [smem:[#allocation10_spill]] }
 0x27e   : > { %s1704_s1 = smov %s1184_s10  ;;  %s1705_s10 = smov %s1188_s11 }
 0x27f   : > { %s1706_s11 = smov %s1338_s27  ;;  %s1707_s12 = smov %s1200_s14 }
 0x280   : > { %s1708_s13 = smov %s1204_s15  ;;  %29 = sbr.rel (!%p27_p6) target bundleno = 31 (0x1f), region = 100 }
 0x282   : > { %s1709_s14 = smov %s1702_s22 }
 0x283   : > { %s1710_s15 = smov %s1703_s19 }
 0x287   :  { %804 = vsyncpa [#allocation6], 1 }
 0x288   :  { %806 = vsyncpa [#allocation6 + $0x1], 1 }

</bundles_post_ra>
